<compile_context>
chip_gen: v5e
topology: v5e:2x2
jax: 0.10.0
libtpu: 0.0.40
codegen_flags: <defaults>
</compile_context>

<pallas_src>
import functools
import math

import jax
import jax.numpy as jnp
from jax.experimental import pallas as pl
from jax.experimental.pallas import tpu as pltpu

_OUT_LANES = 128  # lane-dense packed output width


def _round_up(x, m):
    return ((x + m - 1) // m) * m


def _choose_tm(T, dim, itemsize, budget_bytes=16 << 20):
    """Pick a token-tile size: as large as the VMEM budget allows, multiple of 8."""
    # Per-row cost inside the kernel: x double-buffered + packed output double-buffered.
    per_row = 2 * dim * itemsize + 2 * _OUT_LANES * 4
    tm = budget_bytes // per_row
    tm = max(8, min(1024, (tm // 8) * 8))
    tm = min(tm, _round_up(T, 8))
    return int(tm)


def _sigma_gate_kernel(x_ref, w_ref, out_ref, *, k_experts):
    # x_ref: (TM, dim) in compute dtype (bf16 by default); w_ref: (E, dim).
    x = x_ref[...]
    w = w_ref[...]

    # logits = x @ W.T without materializing a transpose: contract on the shared
    # last dim so the MXU consumes the (E, dim) weight directly, f32 accumulation.
    logits = jax.lax.dot_general(
        x, w,
        dimension_numbers=(((1,), (1,)), ((), ())),
        preferred_element_type=jnp.float32,
    )  # (TM, E) f32

    TM, E = logits.shape
    col_ids = jax.lax.broadcasted_iota(jnp.int32, (TM, E), dimension=1)  # hoisted once
    neg_big = jnp.float32(-3.0e38)  # large finite negative; avoid -inf special paths

    # Iterative top-k on the raw logits (softmax is order-preserving, so indices and
    # the renormalized weights are identical to top-k on softmax scores).
    work = logits
    topk_vals = []
    topk_ids = []
    for _ in range(k_experts):
        v = jnp.max(work, axis=-1, keepdims=True)                         # (TM, 1)
        # first index achieving the max (tie-break = lowest index, matches top_k)
        i = jnp.min(jnp.where(work == v, col_ids, E),
                    axis=-1, keepdims=True).astype(jnp.int32)             # (TM, 1)
        topk_vals.append(v)
        topk_ids.append(i)
        work = jnp.where(col_ids == i, neg_big, work)

    topk_l = jnp.concatenate(topk_vals, axis=-1)   # (TM, k), descending
    topk_i = jnp.concatenate(topk_ids, axis=-1)    # (TM, k) int32

    # Softmax restricted to the k winners: exp(l - rowmax) / sum over winners.
    # (Full-width softmax cancels under the final renormalization; rowmax = topk_vals[0].)
    e = jnp.exp(topk_l - topk_vals[0])                                    # (TM, k)
    wgt = e * pl.reciprocal(jnp.sum(e, axis=-1, keepdims=True), approx=True)

    # Lane-dense packed output slab: weights in lanes [0,k), index bits in [k,2k), zero pad.
    idx_bits = pltpu.bitcast(topk_i, jnp.float32)                         # (TM, k)
    pad = jnp.zeros((TM, out_ref.shape[-1] - 2 * k_experts), jnp.float32)
    out_ref[...] = jnp.concatenate([wgt, idx_bits, pad], axis=-1)


@functools.partial(jax.jit, static_argnames=("k_experts", "compute_dtype", "tm"))
def sigma_gate(x, weight, k_experts, *, compute_dtype=jnp.bfloat16, tm=None):
    """x: (..., dim); weight: (n_experts, dim). Returns (topk_idx int32, topk_weight f32)."""
    dim = x.shape[-1]
    n_experts = weight.shape[0]
    assert 2 * k_experts <= _OUT_LANES

    x2 = x.reshape(-1, dim).astype(compute_dtype)      # same as torch view(-1, dim)
    w = weight.astype(compute_dtype)
    T = x2.shape[0]
    itemsize = jnp.dtype(compute_dtype).itemsize

    if tm is None:
        tm = _choose_tm(T, dim, itemsize)
    T_pad = _round_up(T, tm)
    if T_pad != T:
        # Tail handling: pad with zero rows (finite junk outputs), sliced off below.
        x2 = jnp.pad(x2, ((0, T_pad - T), (0, 0)))

    grid = (T_pad // tm,)

    # VMEM budget: x (2 buffers) + weight (2 buffers) + packed output (2 buffers) + headroom.
    need = (2 * tm * dim * itemsize
            + 2 * n_experts * dim * itemsize
            + 2 * tm * _OUT_LANES * 4)
    vmem_limit = int(need + (8 << 20))

    cost = pl.CostEstimate(
        flops=2 * T_pad * dim * n_experts,
        transcendentals=T_pad * k_experts,
        bytes_accessed=(T_pad * dim * itemsize
                        + n_experts * dim * itemsize
                        + T_pad * _OUT_LANES * 4),
    )

    kernel = functools.partial(_sigma_gate_kernel, k_experts=k_experts)

    packed = pl.pallas_call(
        kernel,
        out_shape=jax.ShapeDtypeStruct((T_pad, _OUT_LANES), jnp.float32),
        grid_spec=pltpu.PrefetchScalarGridSpec(
            num_scalar_prefetch=0,
            grid=grid,
            in_specs=[
                pl.BlockSpec((tm, dim), lambda i: (i, 0)),          # x tile, pipelined
                pl.BlockSpec((n_experts, dim), lambda i: (0, 0)),   # weight stays resident
            ],
            out_specs=pl.BlockSpec((tm, _OUT_LANES), lambda i: (i, 0)),
        ),
        compiler_params=pltpu.CompilerParams(
            dimension_semantics=("parallel",),
            vmem_limit_bytes=vmem_limit,
        ),
        cost_estimate=cost,
    )(x2, w)

    packed = packed[:T]
    topk_weight = packed[:, :k_experts]
    topk_idx = jax.lax.bitcast_convert_type(packed[:, k_experts:2 * k_experts], jnp.int32)
    return topk_idx, topk_weight


def _reference(x, weight, k_experts, compute_dtype=jnp.bfloat16):
    """Pure-JAX reference mirroring the PyTorch forward (same compute dtype as kernel)."""
    x2 = x.reshape(-1, x.shape[-1]).astype(compute_dtype)
    w = weight.astype(compute_dtype)
    logits = jax.lax.dot_general(x2, w, (((1,), (1,)), ((), ())),
                                 preferred_element_type=jnp.float32)
    scores = jax.nn.softmax(logits, axis=-1)
    vals, ids = jax.lax.top_k(scores, k_experts)
    denom = jnp.sum(vals, axis=-1, keepdims=True) + 1e-20
    return ids.astype(jnp.int32), (vals / denom).astype(jnp.float32)


def _check(x, weight, k_experts):
    topk_idx, topk_weight = sigma_gate(x, weight, k_experts)
    jax.block_until_ready((topk_idx, topk_weight))
    ref_idx, ref_wgt = _reference(x, weight, k_experts)

    # Set-insensitive comparison (torch.topk sorted=False): sort both by expert id.
    ok = jnp.argsort(topk_idx, axis=-1)
    ork = jnp.argsort(ref_idx, axis=-1)
    k_idx = jnp.take_along_axis(topk_idx, ok, axis=-1)
    k_wgt = jnp.take_along_axis(topk_weight, ok, axis=-1)
    r_idx = jnp.take_along_axis(ref_idx, ork, axis=-1)
    r_wgt = jnp.take_along_axis(ref_wgt, ork, axis=-1)
    assert jnp.array_equal(k_idx, r_idx), "top-k indices mismatch"
    assert jnp.allclose(k_wgt, r_wgt, atol=2e-3, rtol=2e-3), "top-k weights mismatch"
    return topk_idx, topk_weight


if __name__ == "__main__":
    # Small shapes consistent with the module's forward.
    batch, seq, dim = 2, 8, 32
    n_experts, k_experts = 8, 2

    key = jax.random.PRNGKey(0)
    kx, kw, kx2 = jax.random.split(key, 3)

    # Deterministic init matching nn.init.kaiming_uniform_(a=sqrt(5)): bound = 1/sqrt(dim)
    bound = 1.0 / math.sqrt(dim)
    weight = jax.random.uniform(kw, (n_experts, dim), jnp.float32,
                                minval=-bound, maxval=bound)

    x = jax.random.normal(kx, (batch, seq, dim), jnp.float32)
    _check(x, weight, k_experts)

    # Also exercise the padded-tail path (T not a multiple of the tile size).
    x_tail = jax.random.normal(kx2, (3, 5, dim), jnp.float32)   # T = 15
    _check(x_tail, weight, k_experts)

    print("KERNEL_OK")
</pallas_src>

<mosaic_0001>
module attributes {stable_mosaic.version = 11 : i64} {
  func.func @_sigma_gate_kernel(%arg0: i32, %arg1: memref<16x32xbf16, #tpu.memory_space<vmem>>, %arg2: memref<8x32xbf16, #tpu.memory_space<vmem>>, %arg3: memref<16x128xf32, #tpu.memory_space<vmem>>) attributes {dimension_semantics = [#tpu.dimension_semantics<parallel>], iteration_bounds = array<i64: 1>, scalar_prefetch = 0 : i64, scratch_operands = 0 : i64, tpu.core_type = #tpu.core_type<tc>, window_params = [{transform_indices = @transform_0, window_bounds = array<i64: 16, 32>}, {pipeline_mode = #tpu.pipeline_mode<synchronous>, transform_indices = @transform_1, window_bounds = array<i64: 8, 32>}, {transform_indices = @transform_2, window_bounds = array<i64: 16, 128>}]} {
    %c0 = arith.constant 0 : index
    %c0_0 = arith.constant 0 : index
    %0 = vector.load %arg1[%c0, %c0_0] : memref<16x32xbf16, #tpu.memory_space<vmem>>, vector<16x32xbf16>
    %c0_1 = arith.constant 0 : index
    %c0_2 = arith.constant 0 : index
    %1 = vector.load %arg2[%c0_1, %c0_2] : memref<8x32xbf16, #tpu.memory_space<vmem>>, vector<8x32xbf16>
    %cst = arith.constant dense<0.000000e+00> : vector<16x8xf32>
    %2 = tpu.matmul %0, %1, %cst {dimension_numbers = #tpu.dot_dimension_numbers<[1], [1], [0], [0], [0, 0, 1, 0], [], []>} : vector<16x32xbf16>, vector<8x32xbf16>, vector<16x8xf32> -> vector<16x8xf32>
    %3 = tpu.iota {dimensions = array<i32: 1>} : vector<16x8xi32>
    %cst_3 = arith.constant dense<0xFF800000> : vector<16xf32>
    %4 = vector.multi_reduction <maximumf>, %2, %cst_3 [1] : vector<16x8xf32> to vector<16xf32>
    %5 = vector.shape_cast %4 : vector<16xf32> to vector<16x1xf32>
    %6 = vector.broadcast %5 : vector<16x1xf32> to vector<16x8xf32>
    %7 = arith.cmpf oeq, %2, %6 : vector<16x8xf32>
    %c8_i32 = arith.constant 8 : i32
    %8 = vector.broadcast %c8_i32 : i32 to vector<16x8xi32>
    %9 = arith.select %7, %3, %8 : vector<16x8xi1>, vector<16x8xi32>
    %cst_4 = arith.constant dense<2147483647> : vector<16xi32>
    %10 = vector.multi_reduction <minsi>, %9, %cst_4 [1] : vector<16x8xi32> to vector<16xi32>
    %11 = vector.shape_cast %10 : vector<16xi32> to vector<16x1xi32>
    %12 = vector.broadcast %11 : vector<16x1xi32> to vector<16x8xi32>
    %13 = arith.cmpi eq, %3, %12 : vector<16x8xi32>
    %cst_5 = arith.constant -3.000000e+38 : f32
    %14 = vector.broadcast %cst_5 : f32 to vector<16x8xf32>
    %15 = arith.select %13, %14, %2 : vector<16x8xi1>, vector<16x8xf32>
    %cst_6 = arith.constant dense<0xFF800000> : vector<16xf32>
    %16 = vector.multi_reduction <maximumf>, %15, %cst_6 [1] : vector<16x8xf32> to vector<16xf32>
    %17 = vector.shape_cast %16 : vector<16xf32> to vector<16x1xf32>
    %18 = vector.broadcast %17 : vector<16x1xf32> to vector<16x8xf32>
    %19 = arith.cmpf oeq, %15, %18 : vector<16x8xf32>
    %c8_i32_7 = arith.constant 8 : i32
    %20 = vector.broadcast %c8_i32_7 : i32 to vector<16x8xi32>
    %21 = arith.select %19, %3, %20 : vector<16x8xi1>, vector<16x8xi32>
    %cst_8 = arith.constant dense<2147483647> : vector<16xi32>
    %22 = vector.multi_reduction <minsi>, %21, %cst_8 [1] : vector<16x8xi32> to vector<16xi32>
    %23 = vector.shape_cast %22 : vector<16xi32> to vector<16x1xi32>
    %24 = tpu.concatenate %5, %17 in 1 : vector<16x1xf32>, vector<16x1xf32> -> vector<16x2xf32>
    %25 = tpu.concatenate %11, %23 in 1 : vector<16x1xi32>, vector<16x1xi32> -> vector<16x2xi32>
    %26 = vector.broadcast %5 : vector<16x1xf32> to vector<16x2xf32>
    %27 = arith.subf %24, %26 : vector<16x2xf32>
    %28 = math.exp %27 : vector<16x2xf32>
    %cst_9 = arith.constant dense<0.000000e+00> : vector<16xf32>
    %29 = vector.multi_reduction <add>, %28, %cst_9 [1] : vector<16x2xf32> to vector<16xf32>
    %30 = vector.shape_cast %29 : vector<16xf32> to vector<16x1xf32>
    %31 = tpu.reciprocal %30 {approx = true} : vector<16x1xf32> -> vector<16x1xf32>
    %32 = vector.broadcast %31 : vector<16x1xf32> to vector<16x2xf32>
    %33 = arith.mulf %28, %32 : vector<16x2xf32>
    %34 = tpu.bitcast %25 : vector<16x2xi32> -> vector<16x2xf32>
    %cst_10 = arith.constant 0.000000e+00 : f32
    %35 = vector.broadcast %cst_10 : f32 to vector<16x124xf32>
    %36 = tpu.concatenate %33, %34, %35 in 1 : vector<16x2xf32>, vector<16x2xf32>, vector<16x124xf32> -> vector<16x128xf32>
    %c0_11 = arith.constant 0 : index
    %c0_12 = arith.constant 0 : index
    %37 = vector.load %arg3[%c0_11, %c0_12] : memref<16x128xf32, #tpu.memory_space<vmem>>, vector<16x128xf32>
    tpu.vector_store %arg3[%c0_11, %c0_12], %36 {strides = array<i32>} : memref<16x128xf32, #tpu.memory_space<vmem>>, vector<16x128xf32>,
    return
  }
  func.func @transform_0(%arg0: i32) -> (i32, i32) {
    %c0_i32 = arith.constant 0 : i32
    %c0_i32_0 = arith.constant 0 : i32
    return %arg0, %c0_i32 : i32, i32
  }
  func.func @transform_1(%arg0: i32) -> (i32, i32) {
    %c0_i32 = arith.constant 0 : i32
    %c0_i32_0 = arith.constant 0 : i32
    %c0_i32_1 = arith.constant 0 : i32
    return %c0_i32, %c0_i32_0 : i32, i32
  }
  func.func @transform_2(%arg0: i32) -> (i32, i32) {
    %c0_i32 = arith.constant 0 : i32
    %c0_i32_0 = arith.constant 0 : i32
    return %arg0, %c0_i32 : i32, i32
  }
}

</mosaic_0001>

<bundles_post_ra>
// kernel: sigma_gate.1
= control target key start
LH: loop header
LB: loop body
LE: loop exit
PB: predicated region body
PF: predicated region fallthrough
CT: control target
= control target key end

     0   :  { %vm20_vm0 = vcmask 261120   ;;  %vm43_vm1 = vcmask 64512   ;;  %v41_v7 = vlaneseq  ;;  %vm128_vm8 = vcmask 7168   ;;  %s235_s1 = inlined_call_operand.vmem [shape: bf16[8,32], index: 1, kind: input, shape index: {}]   ;;  %s236_s0 = inlined_call_operand.vmem [shape: bf16[16,32], index: 0, kind: input, shape index: {}]   ;;  %s237_s2 = inlined_call_operand.vmem [shape: f32[16,128], index: 2, kind: output, shape index: {}]  }
   0x1   :  { %v14_v0 = vld [vmem:[%s235_s1] sm:$0xf]  ;;  %vm139_vm11 = vcmask 15360   ;;  %vm158_vm14 = vcmask 31744  }
   0x2   :  { %v25_v1 = vsel %vm20_vm0, %v14_v0, 0  ;;  %v172_v2 = vld [vmem:[%s236_s0] sm:$0xff]  ;;  %v42_v8 = vand.u32 127, %v41_v7  ;;  %s182_s0 = smov 2  }
   0x3   :  { %34 = vmatpush.bf16.xpose.msra.mxu0 %v25_v1 }
   0xa   :  { %171 = vmatmul.msk.bf16.vlgmr.msra.gmra.mxu0 %vm20_vm0, %v172_v2 }
  0x87   :  { %v36_v3 = vpop.f32.mrf.mxu0 }
  0x88   :  { %v44_v4 = vsel %vm43_vm1, %v36_v3, -inf }
  0x89   :  { %45 = vmax.xlane.f32.xlu0 %v44_v4 }
  0x8f   :  { %v38_v5 = vpop.f32.mrf.mxu0 }
  0x90   :  { %v47_v6 = vsel %vm43_vm1, %v38_v5, -inf }
  0x91   :  { %48 = vmax.xlane.f32.xlu0 %v47_v6 }
  0xfc   :  { %v46_v9 = vpop.xlane.xlu0 %45 }
  0xfd   :  { %vm50_vm2 = vcmp.eq.f32.partialorder %v36_v3, %v46_v9 }
  0xfe   :  { %v52_v10 = vsel %vm50_vm2, %v42_v8, 8 }
  0xff   :  { %v54_v11 = vsel %vm43_vm1, %v52_v10, 2147483647 }
 0x100   :  { %v56_v12 = vshra.s32 %v54_v11, 16  ;;  %v55_v19 = vand.u32 65535, %v54_v11 }
 0x102   :  { %v58_v13 = vcvt.s32.f32 %v56_v12  ;;  %v57_v21 = vcvt.s32.f32 %v55_v19 }
 0x104   :  { %59 = vmin.xlane.f32.xlu1 %v58_v13  ;;  %v207_v14 = vpop.xlane.xlu0 %48 }
 0x105   :  { %vm51_vm3 = vcmp.eq.f32.partialorder %v38_v5, %v207_v14 }
 0x106   :  { %v53_v15 = vsel %vm51_vm3, %v42_v8, 8 }
 0x107   :  { %v69_v16 = vsel %vm43_vm1, %v53_v15, 2147483647 }
 0x108   :  { %v71_v17 = vshra.s32 %v69_v16, 16  ;;  %v70_v23 = vand.u32 65535, %v69_v16 }
 0x10a   :  { %v73_v18 = vcvt.s32.f32 %v71_v17  ;;  %v72_v25 = vcvt.s32.f32 %v70_v23 }
 0x10c   :  { %74 = vmin.xlane.f32.xlu1 %v73_v18 }
 0x177   :  { %v60_v20 = vpop.xlane.xlu1 %59 }
 0x178   :  { %vm61_vm4 = vcmp.eq.f32.partialorder %v58_v13, %v60_v20  ;;  %v66_v27 = vcvt.f32.s32 %v60_v20 }
 0x179   :  { %v62_v22 = vsel %vm61_vm4, %v57_v21, inf }
 0x17a   :  { %63 = vmin.xlane.f32.xlu2 %v62_v22  ;;  %v67_v29 = vshll.u32 %v66_v27, 16 }
 0x17f   :  { %v75_v24 = vpop.xlane.xlu1 %74 }
 0x180   :  { %vm76_vm5 = vcmp.eq.f32.partialorder %v73_v18, %v75_v24  ;;  %v81_v32 = vcvt.f32.s32 %v75_v24 }
 0x181   :  { %v77_v26 = vsel %vm76_vm5, %v72_v25, inf }
 0x182   :  { %78 = vmin.xlane.f32.xlu2 %v77_v26  ;;  %v82_v36 = vshll.u32 %v81_v32, 16 }
 0x1ed   :  { %v64_v28 = vpop.xlane.xlu2 %63 }
 0x1ee   :  { %v65_v30 = vcvt.f32.s32 %v64_v28 }
 0x1f0   :  { %v211_v31 = vadd.s32 %v67_v29, %v65_v30 }
 0x1f2   :  { %vm84_vm6 = vcmp.eq.s32.totalorder %v42_v8, %v211_v31 }
 0x1f3   :  { %v86_v33 = vsel %vm84_vm6, -3e+38, %v36_v3 }
 0x1f4   :  { %v88_v34 = vsel %vm43_vm1, %v86_v33, -inf }
 0x1f5   :  { %89 = vmax.xlane.f32.xlu0 %v88_v34  ;;  %v79_v35 = vpop.xlane.xlu2 %78 }
 0x1f6   :  { %v80_v37 = vcvt.f32.s32 %v79_v35 }
 0x1f8   :  { %v83_v38 = vadd.s32 %v82_v36, %v80_v37 }
 0x1fa   :  { %vm85_vm7 = vcmp.eq.s32.totalorder %v42_v8, %v83_v38 }
 0x1fb   :  { %v87_v39 = vsel %vm85_vm7, -3e+38, %v38_v5 }
 0x1fc   :  { %v91_v40 = vsel %vm43_vm1, %v87_v39, -inf }
 0x1fd   :  { %92 = vmax.xlane.f32.xlu1 %v91_v40 }
 0x268   :  { %v90_v41 = vpop.xlane.xlu0 %89 }
 0x269   :  { %vm94_vm9 = vcmp.eq.f32.partialorder %v86_v33, %v90_v41  ;;  %v129_v43 = vsel %vm128_vm8, %v46_v9, %v90_v41 }
 0x26a   :  { %v96_v42 = vsel %vm94_vm9, %v42_v8, 8  ;;  %v133_v46 = vsub.f32 %v129_v43, %v46_v9 }
 0x26b   :  { %v98_v44 = vsel %vm43_vm1, %v96_v42, 2147483647 }
 0x26c   :  { %v100_v45 = vshra.s32 %v98_v44, 16  ;;  %v135_v49 = vmul.f32 1.442695, %v133_v46  ;;  %v99_v58 = vand.u32 65535, %v98_v44 }
 0x26e   :  { %v102_v47 = vcvt.s32.f32 %v100_v45  ;;  %174 = vpow2.f32 %v135_v49  ;;  %v101_v61 = vcvt.s32.f32 %v99_v58 }
 0x270   :  { %v93_v48 = vpop.xlane.xlu1 %92  ;;  %103 = vmin.xlane.f32.xlu2 %v102_v47 }
 0x271   :  { %vm95_vm10 = vcmp.eq.f32.partialorder %v87_v39, %v93_v48  ;;  %v130_v56 = vsel %vm128_vm8, %v207_v14, %v93_v48 }
 0x272   :  { %v97_v50 = vsel %vm95_vm10, %v42_v8, 8  ;;  %v134_v57 = vsub.f32 %v130_v56, %v207_v14 }
 0x273   :  { %v113_v51 = vsel %vm43_vm1, %v97_v50, 2147483647 }
 0x274   :  { %v115_v52 = vshra.s32 %v113_v51, 16  ;;  %v175_v54 = vpop.eup %174  ;;  %v137_v59 = vmul.f32 1.442695, %v134_v57  ;;  %v114_v63 = vand.u32 65535, %v113_v51 }
 0x275   :  { %v140_v55 = vsel %vm139_vm11, %v175_v54, 0.0 }
 0x276   :  { %v117_v53 = vcvt.s32.f32 %v115_v52  ;;  %176 = vpow2.f32 %v137_v59  ;;  %v116_v2 = vcvt.s32.f32 %v114_v63 }
 0x278   :  { %118 = vmin.xlane.f32.xlu0 %v117_v53 }
 0x27c   :  { %v177_v0 = vpop.eup %176 }
 0x27d   :  { %v143_v3 = vsel %vm139_vm11, %v177_v0, 0.0 }
 0x280   :  { %141 = vadd.xlane.f32.xlu0 %v140_v55 }
 0x2e3   :  { %v104_v60 = vpop.xlane.xlu2 %103 }
 0x2e4   :  { %vm105_vm12 = vcmp.eq.f32.partialorder %v102_v47, %v104_v60  ;;  %v110_v5 = vcvt.f32.s32 %v104_v60 }
 0x2e5   :  { %v106_v62 = vsel %vm105_vm12, %v101_v61, inf }
 0x2e6   :  { %107 = vmin.xlane.f32.xlu1 %v106_v62  ;;  %v111_v7 = vshll.u32 %v110_v5, 16 }
 0x2eb   :  { %v119_v1 = vpop.xlane.xlu0 %118 }
 0x2ec   :  { %vm120_vm13 = vcmp.eq.f32.partialorder %v117_v53, %v119_v1  ;;  %v125_v10 = vcvt.f32.s32 %v119_v1 }
 0x2ed   :  { %v121_v4 = vsel %vm120_vm13, %v116_v2, inf }
 0x2ee   :  { %144 = vadd.xlane.f32.xlu1 %v143_v3  ;;  %122 = vmin.xlane.f32.xlu2 %v121_v4  ;;  %v126_v13 = vshll.u32 %v125_v10, 16 }
 0x2f3   :  { %v142_v17 = vpop.xlane.xlu0 %141 }
 0x2f4   :  { %178 = vrcp.f32 %v142_v17 }
 0x2fa   :  { %v179_v18 = vpop.eup %178 }
 0x2fb   :  { %v148_v19 = vmul.f32 %v179_v18, %v175_v54 }
 0x359   :  { %v108_v6 = vpop.xlane.xlu1 %107 }
 0x35a   :  { %v109_v8 = vcvt.f32.s32 %v108_v6 }
 0x35c   :  { %v112_v9 = vadd.s32 %v111_v7, %v109_v8 }
 0x35e   :  { %v131_v11 = vsel %vm128_vm8, %v211_v31, %v112_v9 }
 0x35f   :  { %150 = vrot.lane.b32.xlu2 %v131_v11, %s182_s0 }
 0x361   :  { %v123_v12 = vpop.xlane.xlu2 %122  ;;  %v145_v23 = vpop.xlane.xlu1 %144 }
 0x362   :  { %v124_v14 = vcvt.f32.s32 %v123_v12  ;;  %180 = vrcp.f32 %v145_v23 }
 0x364   :  { %v127_v15 = vadd.s32 %v126_v13, %v124_v14 }
 0x366   :  { %v132_v16 = vsel %vm128_vm8, %v83_v38, %v127_v15 }
 0x367   :  { %152 = vrot.lane.b32.xlu0 %v132_v16, %s182_s0 }
 0x368   :  { %v181_v24 = vpop.eup %180 }
 0x369   :  { %v149_v25 = vmul.f32 %v181_v24, %v177_v0 }
 0x3b9   :  { %v151_v20 = vpop.permute.xlu2 %150 }
 0x3ba   :  { %v156_v21 = vsel %vm139_vm11, %v148_v19, %v151_v20 }
 0x3bb   :  { %v159_v22 = vsel %vm158_vm14, %v156_v21, 0.0 }
 0x3bc   :  { %161 = vst [vmem:[%s237_s2] sm:$0xff] %v159_v22 }
 0x3d9   :  { %v153_v26 = vpop.permute.xlu0 %152 }
 0x3da   :  { %v157_v27 = vsel %vm139_vm11, %v149_v25, %v153_v26 }
 0x3db   :  { %v160_v28 = vsel %vm158_vm14, %v157_v27, 0.0 }
 0x3dc   :  { %162 = vst [vmem:[%s237_s2 + $0x8] sm:$0xff] %v160_v28 }

</bundles_post_ra>
